<compile_context>
chip_gen: v5e
topology: v5e:2x2
jax: 0.10.0
libtpu: 0.0.40
codegen_flags: <defaults>
</compile_context>

<pallas_src>
import jax
import jax.numpy as jnp
from jax.experimental import pallas as pl
from jax.experimental.pallas import tpu as pltpu

# ----------------------- config (FlowAuto / F_auto_spa_can) -----------------------
N_DOMAINS = 3      # config.n_domains
LATENT_DIM = 16    # config.latent_dim  (N)
K_SPA = 4          # config.k_spa      (k)
DEPTH = 4          # config.model_depth
HIDDEN = 64        # normflows MLP hidden width:  MLP([N//2, 64, 64, N])
BATCH = 8
HALF = LATENT_DIM // 2
assert K_SPA <= HALF, "kernel assumes the F-stage only touches the second half (z2) lanes"

# Indices of the learnable strictly-lower-triangular entries (canonical sparse form:
# only the last K_SPA rows of L are nonzero).
_L_ROWS, _L_COLS = [], []
for _i in range(LATENT_DIM - K_SPA, LATENT_DIM):
    for _j in range(_i):
        _L_ROWS.append(_i)
        _L_COLS.append(_j)
L_ROWS = jnp.asarray(_L_ROWS, dtype=jnp.int32)
L_COLS = jnp.asarray(_L_COLS, dtype=jnp.int32)
BLOCK_ROWS = L_ROWS - (LATENT_DIM - K_SPA)       # row index inside the nonzero block
N_L_VALS = len(_L_ROWS)


# --------------------------------- Pallas kernel ----------------------------------
def flow_auto_kernel(ftail_ref, eps_ref, bias_ref,
                     w1_ref, b1_ref, w2_ref, b2_ref, w3_ref, b3_ref,
                     out_ref):
    Bt, N = eps_ref.shape
    h = N // 2
    k = ftail_ref.shape[0]       # K_SPA precomputed rows of (I-L)^{-1} S
    depth = w1_ref.shape[0]

    eps = eps_ref[...]
    bias = bias_ref[...]

    # ---- F stage ----
    # z1 (first half) is provably untouched by the canonical-sparse F (K_SPA <= N/2),
    # so it is computed straight from eps + bias -> the depth-0 matmuls below have no
    # dependency on the F-stage reductions and can start immediately (MXU/XLU overlap).
    z1 = eps[:, :h] + bias[:, :h]

    # z2: only its last k lanes are replaced by the precomputed tail rows of
    # M = (I-L)^{-1} S.  The k reductions are mutually independent (pipelineable),
    # and the updates are single selects (no onehot multiply-add).
    col2 = jax.lax.broadcasted_iota(jnp.int32, (1, h), 1)
    z2v = eps[:, h:]
    for r in range(k):
        rdot = jnp.sum(ftail_ref[r] * eps, axis=-1, keepdims=True)   # (Bt, 1)
        z2v = jnp.where(col2 == (h - k + r), rdot, z2v)
    z2 = z2v + bias[:, h:]

    # ---- G stage: depth x (affine coupling + swap permute) ----
    for dd in range(depth):
        a = jnp.dot(z1.astype(jnp.bfloat16), w1_ref[dd],
                    preferred_element_type=jnp.float32) + b1_ref[dd]
        a = jnp.maximum(a, 0.0)          # normflows MLP default activation (leaky=0 -> ReLU)
        a = jnp.dot(a.astype(jnp.bfloat16), w2_ref[dd],
                    preferred_element_type=jnp.float32) + b2_ref[dd]
        a = jnp.maximum(a, 0.0)
        p = jnp.dot(a.astype(jnp.bfloat16), w3_ref[dd],
                    preferred_element_type=jnp.float32) + b3_ref[dd]
        shift = p[:, :h]
        scale = p[:, h:]
        z2_new = z2 * jnp.exp(scale) + shift    # AffineCoupling, scale_map='exp' (unclamped, as in normflows)
        z1, z2 = z2_new, z1                     # Permute(mode='swap')

    # Single lane-contiguous full-tile store.
    out_ref[...] = jnp.concatenate([z1, z2], axis=-1)


# --------------------------------- parameters -------------------------------------
def init_params(key):
    ks = jax.random.split(key, 12)
    p = {}
    # F_auto_spa_can parameters
    p['L_emb'] = 0.2 * jax.random.normal(ks[0], (N_DOMAINS, N_L_VALS), jnp.float32)
    p['S_emb'] = 1.0 + 0.1 * jax.random.normal(ks[1], (N_DOMAINS, K_SPA), jnp.float32)
    p['shared_bias'] = jax.random.normal(ks[2], (LATENT_DIM - K_SPA,), jnp.float32)
    p['bias_emb'] = jax.random.normal(ks[3], (N_DOMAINS, K_SPA), jnp.float32)
    # Gmap coupling MLPs: MLP([HALF, 64, 64, LATENT_DIM]) per depth.
    w1 = 0.2 * jax.random.normal(ks[4], (DEPTH, HALF, HIDDEN), jnp.float32)
    b1 = 0.1 * jax.random.normal(ks[5], (DEPTH, 1, HIDDEN), jnp.float32)
    w2 = 0.2 * jax.random.normal(ks[6], (DEPTH, HIDDEN, HIDDEN), jnp.float32)
    b2 = 0.1 * jax.random.normal(ks[7], (DEPTH, 1, HIDDEN), jnp.float32)
    w3 = 0.1 * jax.random.normal(ks[8], (DEPTH, HIDDEN, LATENT_DIM), jnp.float32)
    b3 = 0.05 * jax.random.normal(ks[9], (DEPTH, 1, LATENT_DIM), jnp.float32)
    # normflows AffineCoupling convention: param[:, 0::2] = shift, param[:, 1::2] = scale.
    # Re-lay-out into one fused head with contiguous [shift | scale] columns (one matmul/depth).
    # TODO(synk): when loading trained PyTorch weights, validate this de-interleave once
    # against the original interleaved head.
    w3_fused = jnp.concatenate([w3[..., 0::2], w3[..., 1::2]], axis=-1)
    b3_fused = jnp.concatenate([b3[..., 0::2], b3[..., 1::2]], axis=-1)
    # Weights bf16 for the MXU; biases stay f32 (added after f32 accumulation).
    p['w1'] = w1.astype(jnp.bfloat16)
    p['w2'] = w2.astype(jnp.bfloat16)
    p['w3'] = w3_fused.astype(jnp.bfloat16)
    p['b1'], p['b2'], p['b3'] = b1, b2, b3_fused
    return p


# ------------------------- wrapper-side F precompute (plain JAX) -------------------
def _build_tail_rows(l_dom, s_dom):
    """Tail (last K_SPA) rows of M_d = (I - L_d)^{-1} S_d, per domain.

    l_dom: (D, N_L_VALS) lower-tri values, s_dom: (D, K_SPA) diagonal scales.
    Returns (D, K_SPA, LATENT_DIM).  Exact forward substitution, vectorized over
    domains; only 3 domains so this is negligible wrapper work.
    """
    D = l_dom.shape[0]
    Lrows = jnp.zeros((D, K_SPA, LATENT_DIM), jnp.float32)
    Lrows = Lrows.at[:, BLOCK_ROWS, L_COLS].set(l_dom)
    col = jnp.arange(LATENT_DIM)
    top_mask = (col < LATENT_DIM - K_SPA).astype(jnp.float32)
    rows = []
    for r in range(K_SPA):
        i = LATENT_DIM - K_SPA + r
        row = Lrows[:, r] * top_mask                                  # off-block part (z_top = eps_top)
        row = row + s_dom[:, r:r + 1] * (col == i).astype(jnp.float32)  # diagonal scale
        for q in range(r):                                            # intra-block substitution
            coef = Lrows[:, r, LATENT_DIM - K_SPA + q]
            row = row + coef[:, None] * rows[q]
        rows.append(row)
    return jnp.stack(rows, axis=1)


def build_kernel_inputs(params, d):
    """Gather per-batch F tail rows (K, B, N) and bias (B, N)."""
    B = d.shape[0]
    dom_nz = (jnp.arange(N_DOMAINS) != 0)
    l_dom = params['L_emb'] * dom_nz[:, None].astype(jnp.float32)     # d=0 -> L=0
    s_dom = jnp.where(dom_nz[:, None], params['S_emb'], 1.0)          # d=0 -> S=I
    m_dom = _build_tail_rows(l_dom, s_dom)                            # (n_domains, K, N)
    ftail = jnp.transpose(m_dom[d], (1, 0, 2))                        # (K, B, N)
    bias = jnp.concatenate(
        [jnp.tile(params['shared_bias'][None, :], (B, 1)), params['bias_emb'][d]],
        axis=-1)
    return ftail, bias


# ---------------------------------- wrapper ---------------------------------------
@jax.jit
def flow_auto_forward(params, eps, d):
    B, N = eps.shape
    ftail, bias = build_kernel_inputs(params, d)

    # Batch tile: 128 matches v5e's 128-wide MXU; grid shards tiles across v7x's two
    # TensorCores via dimension_semantics=("parallel",).  At B=8 this is a (1,) grid.
    TB = min(B, 128)
    assert B % TB == 0, "pad the batch to a multiple of the batch tile"  # TODO(synk): pad ragged batches
    grid = (B // TB,)

    in_specs = [
        pl.BlockSpec((K_SPA, TB, N), lambda i: (0, i, 0)),            # F tail rows, per batch tile
        pl.BlockSpec((TB, N), lambda i: (i, 0)),                      # eps
        pl.BlockSpec((TB, N), lambda i: (i, 0)),                      # bias
        # Weights/biases: constant block index -> stay VMEM-resident across grid steps.
        pl.BlockSpec((DEPTH, HALF, HIDDEN), lambda i: (0, 0, 0)),
        pl.BlockSpec((DEPTH, 1, HIDDEN), lambda i: (0, 0, 0)),
        pl.BlockSpec((DEPTH, HIDDEN, HIDDEN), lambda i: (0, 0, 0)),
        pl.BlockSpec((DEPTH, 1, HIDDEN), lambda i: (0, 0, 0)),
        pl.BlockSpec((DEPTH, HIDDEN, N), lambda i: (0, 0, 0)),
        pl.BlockSpec((DEPTH, 1, N), lambda i: (0, 0, 0)),
    ]
    out_specs = pl.BlockSpec((TB, N), lambda i: (i, 0))

    return pl.pallas_call(
        flow_auto_kernel,
        out_shape=jax.ShapeDtypeStruct((B, N), jnp.float32),
        grid=grid,
        in_specs=in_specs,
        out_specs=out_specs,
        compiler_params=pltpu.CompilerParams(dimension_semantics=("parallel",)),
    )(ftail, eps, bias,
      params['w1'], params['b1'], params['w2'], params['b2'],
      params['w3'], params['b3'])


# ------------------------------ pure-JAX reference ---------------------------------
def gather_domain_params(params, d):
    """Per-batch embeddings (reference path only)."""
    B = d.shape[0]
    nonzero = (d != 0)
    l_vals = params['L_emb'][d] * nonzero[:, None].astype(jnp.float32)        # (B, nL)
    s_vals = jnp.where(nonzero[:, None], params['S_emb'][d], 1.0)             # (B, k)
    s_diag = jnp.ones((B, LATENT_DIM), jnp.float32)
    s_diag = s_diag.at[:, LATENT_DIM - K_SPA:].set(s_vals)
    bias = jnp.concatenate(
        [jnp.tile(params['shared_bias'][None, :], (B, 1)), params['bias_emb'][d]],
        axis=-1)
    return l_vals, s_diag, bias


def _mm(x, w_bf16):
    # Same bf16-operand / f32-accumulate math as the kernel's MXU dots.
    return jnp.dot(x.astype(jnp.bfloat16), w_bf16, preferred_element_type=jnp.float32)


def flow_auto_reference(params, eps, d):
    B, N = eps.shape
    l_vals, s_diag, bias = gather_domain_params(params, d)
    # Dense (I - L)^{-1} S solve -- independent check of the wrapper's forward substitution.
    L = jnp.zeros((B, N, N), jnp.float32).at[:, L_ROWS, L_COLS].set(l_vals)
    I = jnp.eye(N, dtype=jnp.float32)[None]
    S = jax.vmap(jnp.diag)(s_diag)
    F = jnp.linalg.solve(I - L, S)
    z = jnp.einsum('bij,bj->bi', F, eps) + bias
    h = N // 2
    z1, z2 = z[:, :h], z[:, h:]
    for dd in range(DEPTH):
        a = jnp.maximum(_mm(z1, params['w1'][dd]) + params['b1'][dd], 0.0)
        a = jnp.maximum(_mm(a, params['w2'][dd]) + params['b2'][dd], 0.0)
        p = _mm(a, params['w3'][dd]) + params['b3'][dd]
        shift, scale = p[:, :h], p[:, h:]
        z1, z2 = z2 * jnp.exp(scale) + shift, z1
    return jnp.concatenate([z1, z2], axis=-1)


if __name__ == "__main__":
    key = jax.random.PRNGKey(0)
    kp, ke = jax.random.split(key)
    params = init_params(kp)

    eps = jax.random.normal(ke, (BATCH, LATENT_DIM), jnp.float32)
    d = jnp.array([0, 1, 2, 0, 1, 2, 0, 1], dtype=jnp.int32)

    x = flow_auto_forward(params, eps, d)
    x = jax.block_until_ready(x)

    x_ref = flow_auto_reference(params, eps, d)
    assert x.shape == (BATCH, LATENT_DIM)
    assert jnp.allclose(x, x_ref, atol=1e-3, rtol=1e-3), "kernel/reference mismatch"

    print("KERNEL_OK")
</pallas_src>

<mosaic_0001>
module attributes {stable_mosaic.version = 11 : i64} {
  func.func @flow_auto_kernel(%arg0: i32, %arg1: memref<4x8x16xf32, #tpu.memory_space<vmem>>, %arg2: memref<8x16xf32, #tpu.memory_space<vmem>>, %arg3: memref<8x16xf32, #tpu.memory_space<vmem>>, %arg4: memref<4x8x64xbf16, #tpu.memory_space<vmem>>, %arg5: memref<4x1x64xf32, #tpu.memory_space<vmem>>, %arg6: memref<4x64x64xbf16, #tpu.memory_space<vmem>>, %arg7: memref<4x1x64xf32, #tpu.memory_space<vmem>>, %arg8: memref<4x64x16xbf16, #tpu.memory_space<vmem>>, %arg9: memref<4x1x16xf32, #tpu.memory_space<vmem>>, %arg10: memref<8x16xf32, #tpu.memory_space<vmem>>) attributes {dimension_semantics = [#tpu.dimension_semantics<parallel>], iteration_bounds = array<i64: 1>, scalar_prefetch = 0 : i64, scratch_operands = 0 : i64, tpu.core_type = #tpu.core_type<tc>, window_params = [{transform_indices = @transform_0, window_bounds = array<i64: 4, 8, 16>}, {transform_indices = @transform_1, window_bounds = array<i64: 8, 16>}, {transform_indices = @transform_2, window_bounds = array<i64: 8, 16>}, {pipeline_mode = #tpu.pipeline_mode<synchronous>, transform_indices = @transform_3, window_bounds = array<i64: 4, 8, 64>}, {pipeline_mode = #tpu.pipeline_mode<synchronous>, transform_indices = @transform_4, window_bounds = array<i64: 4, 1, 64>}, {pipeline_mode = #tpu.pipeline_mode<synchronous>, transform_indices = @transform_5, window_bounds = array<i64: 4, 64, 64>}, {pipeline_mode = #tpu.pipeline_mode<synchronous>, transform_indices = @transform_6, window_bounds = array<i64: 4, 1, 64>}, {pipeline_mode = #tpu.pipeline_mode<synchronous>, transform_indices = @transform_7, window_bounds = array<i64: 4, 64, 16>}, {pipeline_mode = #tpu.pipeline_mode<synchronous>, transform_indices = @transform_8, window_bounds = array<i64: 4, 1, 16>}, {transform_indices = @transform_9, window_bounds = array<i64: 8, 16>}]} {
    %c0 = arith.constant 0 : index
    %c0_0 = arith.constant 0 : index
    %0 = vector.load %arg2[%c0, %c0_0] : memref<8x16xf32, #tpu.memory_space<vmem>>, vector<8x16xf32>
    %c0_1 = arith.constant 0 : index
    %c0_2 = arith.constant 0 : index
    %1 = vector.load %arg3[%c0_1, %c0_2] : memref<8x16xf32, #tpu.memory_space<vmem>>, vector<8x16xf32>
    %2 = vector.extract_strided_slice %0 {offsets = [0, 0], sizes = [8, 8], strides = [1, 1]} : vector<8x16xf32> to vector<8x8xf32>
    %3 = vector.extract_strided_slice %1 {offsets = [0, 0], sizes = [8, 8], strides = [1, 1]} : vector<8x16xf32> to vector<8x8xf32>
    %4 = arith.addf %2, %3 : vector<8x8xf32>
    %5 = tpu.iota {dimensions = array<i32: 1>} : vector<1x8xi32>
    %6 = vector.extract_strided_slice %0 {offsets = [0, 8], sizes = [8, 8], strides = [1, 1]} : vector<8x16xf32> to vector<8x8xf32>
    %c0_3 = arith.constant 0 : index
    %c0_4 = arith.constant 0 : index
    %c0_5 = arith.constant 0 : index
    %7 = vector.load %arg1[%c0_3, %c0_4, %c0_5] : memref<4x8x16xf32, #tpu.memory_space<vmem>>, vector<1x8x16xf32>
    %8 = vector.shape_cast %7 : vector<1x8x16xf32> to vector<8x16xf32>
    %9 = arith.mulf %8, %0 : vector<8x16xf32>
    %cst = arith.constant dense<0.000000e+00> : vector<8xf32>
    %10 = vector.multi_reduction <add>, %9, %cst [1] : vector<8x16xf32> to vector<8xf32>
    %11 = vector.shape_cast %10 : vector<8xf32> to vector<8x1xf32>
    %c4_i32 = arith.constant 4 : i32
    %12 = vector.broadcast %c4_i32 : i32 to vector<1x8xi32>
    %13 = arith.cmpi eq, %5, %12 : vector<1x8xi32>
    %14 = vector.shape_cast %13 : vector<1x8xi1> to vector<1x8xi1>
    %15 = vector.broadcast %14 : vector<1x8xi1> to vector<8x8xi1>
    %16 = vector.shape_cast %11 : vector<8x1xf32> to vector<8x1xf32>
    %17 = vector.broadcast %16 : vector<8x1xf32> to vector<8x8xf32>
    %18 = arith.select %15, %17, %6 : vector<8x8xi1>, vector<8x8xf32>
    %c1 = arith.constant 1 : index
    %c0_6 = arith.constant 0 : index
    %c0_7 = arith.constant 0 : index
    %19 = vector.load %arg1[%c1, %c0_6, %c0_7] : memref<4x8x16xf32, #tpu.memory_space<vmem>>, vector<1x8x16xf32>
    %20 = vector.shape_cast %19 : vector<1x8x16xf32> to vector<8x16xf32>
    %21 = arith.mulf %20, %0 : vector<8x16xf32>
    %cst_8 = arith.constant dense<0.000000e+00> : vector<8xf32>
    %22 = vector.multi_reduction <add>, %21, %cst_8 [1] : vector<8x16xf32> to vector<8xf32>
    %23 = vector.shape_cast %22 : vector<8xf32> to vector<8x1xf32>
    %c5_i32 = arith.constant 5 : i32
    %24 = vector.broadcast %c5_i32 : i32 to vector<1x8xi32>
    %25 = arith.cmpi eq, %5, %24 : vector<1x8xi32>
    %26 = vector.shape_cast %25 : vector<1x8xi1> to vector<1x8xi1>
    %27 = vector.broadcast %26 : vector<1x8xi1> to vector<8x8xi1>
    %28 = vector.shape_cast %23 : vector<8x1xf32> to vector<8x1xf32>
    %29 = vector.broadcast %28 : vector<8x1xf32> to vector<8x8xf32>
    %30 = arith.select %27, %29, %18 : vector<8x8xi1>, vector<8x8xf32>
    %c2 = arith.constant 2 : index
    %c0_9 = arith.constant 0 : index
    %c0_10 = arith.constant 0 : index
    %31 = vector.load %arg1[%c2, %c0_9, %c0_10] : memref<4x8x16xf32, #tpu.memory_space<vmem>>, vector<1x8x16xf32>
    %32 = vector.shape_cast %31 : vector<1x8x16xf32> to vector<8x16xf32>
    %33 = arith.mulf %32, %0 : vector<8x16xf32>
    %cst_11 = arith.constant dense<0.000000e+00> : vector<8xf32>
    %34 = vector.multi_reduction <add>, %33, %cst_11 [1] : vector<8x16xf32> to vector<8xf32>
    %35 = vector.shape_cast %34 : vector<8xf32> to vector<8x1xf32>
    %c6_i32 = arith.constant 6 : i32
    %36 = vector.broadcast %c6_i32 : i32 to vector<1x8xi32>
    %37 = arith.cmpi eq, %5, %36 : vector<1x8xi32>
    %38 = vector.shape_cast %37 : vector<1x8xi1> to vector<1x8xi1>
    %39 = vector.broadcast %38 : vector<1x8xi1> to vector<8x8xi1>
    %40 = vector.shape_cast %35 : vector<8x1xf32> to vector<8x1xf32>
    %41 = vector.broadcast %40 : vector<8x1xf32> to vector<8x8xf32>
    %42 = arith.select %39, %41, %30 : vector<8x8xi1>, vector<8x8xf32>
    %c3 = arith.constant 3 : index
    %c0_12 = arith.constant 0 : index
    %c0_13 = arith.constant 0 : index
    %43 = vector.load %arg1[%c3, %c0_12, %c0_13] : memref<4x8x16xf32, #tpu.memory_space<vmem>>, vector<1x8x16xf32>
    %44 = vector.shape_cast %43 : vector<1x8x16xf32> to vector<8x16xf32>
    %45 = arith.mulf %44, %0 : vector<8x16xf32>
    %cst_14 = arith.constant dense<0.000000e+00> : vector<8xf32>
    %46 = vector.multi_reduction <add>, %45, %cst_14 [1] : vector<8x16xf32> to vector<8xf32>
    %47 = vector.shape_cast %46 : vector<8xf32> to vector<8x1xf32>
    %c7_i32 = arith.constant 7 : i32
    %48 = vector.broadcast %c7_i32 : i32 to vector<1x8xi32>
    %49 = arith.cmpi eq, %5, %48 : vector<1x8xi32>
    %50 = vector.shape_cast %49 : vector<1x8xi1> to vector<1x8xi1>
    %51 = vector.broadcast %50 : vector<1x8xi1> to vector<8x8xi1>
    %52 = vector.shape_cast %47 : vector<8x1xf32> to vector<8x1xf32>
    %53 = vector.broadcast %52 : vector<8x1xf32> to vector<8x8xf32>
    %54 = arith.select %51, %53, %42 : vector<8x8xi1>, vector<8x8xf32>
    %55 = vector.extract_strided_slice %1 {offsets = [0, 8], sizes = [8, 8], strides = [1, 1]} : vector<8x16xf32> to vector<8x8xf32>
    %56 = arith.addf %54, %55 : vector<8x8xf32>
    %57 = arith.truncf %4 : vector<8x8xf32> to vector<8x8xbf16>
    %c0_15 = arith.constant 0 : index
    %c0_16 = arith.constant 0 : index
    %c0_17 = arith.constant 0 : index
    %58 = vector.load %arg4[%c0_15, %c0_16, %c0_17] : memref<4x8x64xbf16, #tpu.memory_space<vmem>>, vector<1x8x64xbf16>
    %59 = vector.shape_cast %58 : vector<1x8x64xbf16> to vector<8x64xbf16>
    %cst_18 = arith.constant dense<0.000000e+00> : vector<8x64xf32>
    %60 = tpu.matmul %57, %59, %cst_18 {dimension_numbers = #tpu.dot_dimension_numbers<[1], [0], [0], [1], [0, 0, 1, 1], [], []>} : vector<8x8xbf16>, vector<8x64xbf16>, vector<8x64xf32> -> vector<8x64xf32>
    %c0_19 = arith.constant 0 : index
    %c0_20 = arith.constant 0 : index
    %c0_21 = arith.constant 0 : index
    %61 = vector.load %arg5[%c0_19, %c0_20, %c0_21] : memref<4x1x64xf32, #tpu.memory_space<vmem>>, vector<1x1x64xf32>
    %62 = vector.shape_cast %61 : vector<1x1x64xf32> to vector<1x64xf32>
    %63 = vector.broadcast %62 : vector<1x64xf32> to vector<8x64xf32>
    %64 = arith.addf %60, %63 : vector<8x64xf32>
    %cst_22 = arith.constant 0.000000e+00 : f32
    %65 = vector.broadcast %cst_22 : f32 to vector<8x64xf32>
    %66 = arith.maximumf %64, %65 : vector<8x64xf32>
    %67 = arith.truncf %66 : vector<8x64xf32> to vector<8x64xbf16>
    %c0_23 = arith.constant 0 : index
    %c0_24 = arith.constant 0 : index
    %c0_25 = arith.constant 0 : index
    %68 = vector.load %arg6[%c0_23, %c0_24, %c0_25] : memref<4x64x64xbf16, #tpu.memory_space<vmem>>, vector<1x64x64xbf16>
    %69 = vector.shape_cast %68 : vector<1x64x64xbf16> to vector<64x64xbf16>
    %cst_26 = arith.constant dense<0.000000e+00> : vector<8x64xf32>
    %70 = tpu.matmul %67, %69, %cst_26 {dimension_numbers = #tpu.dot_dimension_numbers<[1], [0], [0], [1], [0, 0, 1, 1], [], []>} : vector<8x64xbf16>, vector<64x64xbf16>, vector<8x64xf32> -> vector<8x64xf32>
    %c0_27 = arith.constant 0 : index
    %c0_28 = arith.constant 0 : index
    %c0_29 = arith.constant 0 : index
    %71 = vector.load %arg7[%c0_27, %c0_28, %c0_29] : memref<4x1x64xf32, #tpu.memory_space<vmem>>, vector<1x1x64xf32>
    %72 = vector.shape_cast %71 : vector<1x1x64xf32> to vector<1x64xf32>
    %73 = vector.broadcast %72 : vector<1x64xf32> to vector<8x64xf32>
    %74 = arith.addf %70, %73 : vector<8x64xf32>
    %cst_30 = arith.constant 0.000000e+00 : f32
    %75 = vector.broadcast %cst_30 : f32 to vector<8x64xf32>
    %76 = arith.maximumf %74, %75 : vector<8x64xf32>
    %77 = arith.truncf %76 : vector<8x64xf32> to vector<8x64xbf16>
    %c0_31 = arith.constant 0 : index
    %c0_32 = arith.constant 0 : index
    %c0_33 = arith.constant 0 : index
    %78 = vector.load %arg8[%c0_31, %c0_32, %c0_33] : memref<4x64x16xbf16, #tpu.memory_space<vmem>>, vector<1x64x16xbf16>
    %79 = vector.shape_cast %78 : vector<1x64x16xbf16> to vector<64x16xbf16>
    %cst_34 = arith.constant dense<0.000000e+00> : vector<8x16xf32>
    %80 = tpu.matmul %77, %79, %cst_34 {dimension_numbers = #tpu.dot_dimension_numbers<[1], [0], [0], [1], [0, 0, 1, 1], [], []>} : vector<8x64xbf16>, vector<64x16xbf16>, vector<8x16xf32> -> vector<8x16xf32>
    %c0_35 = arith.constant 0 : index
    %c0_36 = arith.constant 0 : index
    %c0_37 = arith.constant 0 : index
    %81 = vector.load %arg9[%c0_35, %c0_36, %c0_37] : memref<4x1x16xf32, #tpu.memory_space<vmem>>, vector<1x1x16xf32>
    %82 = vector.shape_cast %81 : vector<1x1x16xf32> to vector<1x16xf32>
    %83 = vector.broadcast %82 : vector<1x16xf32> to vector<8x16xf32>
    %84 = arith.addf %80, %83 : vector<8x16xf32>
    %85 = vector.extract_strided_slice %84 {offsets = [0, 0], sizes = [8, 8], strides = [1, 1]} : vector<8x16xf32> to vector<8x8xf32>
    %86 = vector.extract_strided_slice %84 {offsets = [0, 8], sizes = [8, 8], strides = [1, 1]} : vector<8x16xf32> to vector<8x8xf32>
    %87 = math.exp %86 : vector<8x8xf32>
    %88 = arith.mulf %56, %87 : vector<8x8xf32>
    %89 = arith.addf %88, %85 : vector<8x8xf32>
    %90 = arith.truncf %89 : vector<8x8xf32> to vector<8x8xbf16>
    %c1_38 = arith.constant 1 : index
    %c0_39 = arith.constant 0 : index
    %c0_40 = arith.constant 0 : index
    %91 = vector.load %arg4[%c1_38, %c0_39, %c0_40] : memref<4x8x64xbf16, #tpu.memory_space<vmem>>, vector<1x8x64xbf16>
    %92 = vector.shape_cast %91 : vector<1x8x64xbf16> to vector<8x64xbf16>
    %cst_41 = arith.constant dense<0.000000e+00> : vector<8x64xf32>
    %93 = tpu.matmul %90, %92, %cst_41 {dimension_numbers = #tpu.dot_dimension_numbers<[1], [0], [0], [1], [0, 0, 1, 1], [], []>} : vector<8x8xbf16>, vector<8x64xbf16>, vector<8x64xf32> -> vector<8x64xf32>
    %c1_42 = arith.constant 1 : index
    %c0_43 = arith.constant 0 : index
    %c0_44 = arith.constant 0 : index
    %94 = vector.load %arg5[%c1_42, %c0_43, %c0_44] : memref<4x1x64xf32, #tpu.memory_space<vmem>>, vector<1x1x64xf32>
    %95 = vector.shape_cast %94 : vector<1x1x64xf32> to vector<1x64xf32>
    %96 = vector.broadcast %95 : vector<1x64xf32> to vector<8x64xf32>
    %97 = arith.addf %93, %96 : vector<8x64xf32>
    %cst_45 = arith.constant 0.000000e+00 : f32
    %98 = vector.broadcast %cst_45 : f32 to vector<8x64xf32>
    %99 = arith.maximumf %97, %98 : vector<8x64xf32>
    %100 = arith.truncf %99 : vector<8x64xf32> to vector<8x64xbf16>
    %c1_46 = arith.constant 1 : index
    %c0_47 = arith.constant 0 : index
    %c0_48 = arith.constant 0 : index
    %101 = vector.load %arg6[%c1_46, %c0_47, %c0_48] : memref<4x64x64xbf16, #tpu.memory_space<vmem>>, vector<1x64x64xbf16>
    %102 = vector.shape_cast %101 : vector<1x64x64xbf16> to vector<64x64xbf16>
    %cst_49 = arith.constant dense<0.000000e+00> : vector<8x64xf32>
    %103 = tpu.matmul %100, %102, %cst_49 {dimension_numbers = #tpu.dot_dimension_numbers<[1], [0], [0], [1], [0, 0, 1, 1], [], []>} : vector<8x64xbf16>, vector<64x64xbf16>, vector<8x64xf32> -> vector<8x64xf32>
    %c1_50 = arith.constant 1 : index
    %c0_51 = arith.constant 0 : index
    %c0_52 = arith.constant 0 : index
    %104 = vector.load %arg7[%c1_50, %c0_51, %c0_52] : memref<4x1x64xf32, #tpu.memory_space<vmem>>, vector<1x1x64xf32>
    %105 = vector.shape_cast %104 : vector<1x1x64xf32> to vector<1x64xf32>
    %106 = vector.broadcast %105 : vector<1x64xf32> to vector<8x64xf32>
    %107 = arith.addf %103, %106 : vector<8x64xf32>
    %cst_53 = arith.constant 0.000000e+00 : f32
    %108 = vector.broadcast %cst_53 : f32 to vector<8x64xf32>
    %109 = arith.maximumf %107, %108 : vector<8x64xf32>
    %110 = arith.truncf %109 : vector<8x64xf32> to vector<8x64xbf16>
    %c1_54 = arith.constant 1 : index
    %c0_55 = arith.constant 0 : index
    %c0_56 = arith.constant 0 : index
    %111 = vector.load %arg8[%c1_54, %c0_55, %c0_56] : memref<4x64x16xbf16, #tpu.memory_space<vmem>>, vector<1x64x16xbf16>
    %112 = vector.shape_cast %111 : vector<1x64x16xbf16> to vector<64x16xbf16>
    %cst_57 = arith.constant dense<0.000000e+00> : vector<8x16xf32>
    %113 = tpu.matmul %110, %112, %cst_57 {dimension_numbers = #tpu.dot_dimension_numbers<[1], [0], [0], [1], [0, 0, 1, 1], [], []>} : vector<8x64xbf16>, vector<64x16xbf16>, vector<8x16xf32> -> vector<8x16xf32>
    %c1_58 = arith.constant 1 : index
    %c0_59 = arith.constant 0 : index
    %c0_60 = arith.constant 0 : index
    %114 = vector.load %arg9[%c1_58, %c0_59, %c0_60] : memref<4x1x16xf32, #tpu.memory_space<vmem>>, vector<1x1x16xf32>
    %115 = vector.shape_cast %114 : vector<1x1x16xf32> to vector<1x16xf32>
    %116 = vector.broadcast %115 : vector<1x16xf32> to vector<8x16xf32>
    %117 = arith.addf %113, %116 : vector<8x16xf32>
    %118 = vector.extract_strided_slice %117 {offsets = [0, 0], sizes = [8, 8], strides = [1, 1]} : vector<8x16xf32> to vector<8x8xf32>
    %119 = vector.extract_strided_slice %117 {offsets = [0, 8], sizes = [8, 8], strides = [1, 1]} : vector<8x16xf32> to vector<8x8xf32>
    %120 = math.exp %119 : vector<8x8xf32>
    %121 = arith.mulf %4, %120 : vector<8x8xf32>
    %122 = arith.addf %121, %118 : vector<8x8xf32>
    %123 = arith.truncf %122 : vector<8x8xf32> to vector<8x8xbf16>
    %c2_61 = arith.constant 2 : index
    %c0_62 = arith.constant 0 : index
    %c0_63 = arith.constant 0 : index
    %124 = vector.load %arg4[%c2_61, %c0_62, %c0_63] : memref<4x8x64xbf16, #tpu.memory_space<vmem>>, vector<1x8x64xbf16>
    %125 = vector.shape_cast %124 : vector<1x8x64xbf16> to vector<8x64xbf16>
    %cst_64 = arith.constant dense<0.000000e+00> : vector<8x64xf32>
    %126 = tpu.matmul %123, %125, %cst_64 {dimension_numbers = #tpu.dot_dimension_numbers<[1], [0], [0], [1], [0, 0, 1, 1], [], []>} : vector<8x8xbf16>, vector<8x64xbf16>, vector<8x64xf32> -> vector<8x64xf32>
    %c2_65 = arith.constant 2 : index
    %c0_66 = arith.constant 0 : index
    %c0_67 = arith.constant 0 : index
    %127 = vector.load %arg5[%c2_65, %c0_66, %c0_67] : memref<4x1x64xf32, #tpu.memory_space<vmem>>, vector<1x1x64xf32>
    %128 = vector.shape_cast %127 : vector<1x1x64xf32> to vector<1x64xf32>
    %129 = vector.broadcast %128 : vector<1x64xf32> to vector<8x64xf32>
    %130 = arith.addf %126, %129 : vector<8x64xf32>
    %cst_68 = arith.constant 0.000000e+00 : f32
    %131 = vector.broadcast %cst_68 : f32 to vector<8x64xf32>
    %132 = arith.maximumf %130, %131 : vector<8x64xf32>
    %133 = arith.truncf %132 : vector<8x64xf32> to vector<8x64xbf16>
    %c2_69 = arith.constant 2 : index
    %c0_70 = arith.constant 0 : index
    %c0_71 = arith.constant 0 : index
    %134 = vector.load %arg6[%c2_69, %c0_70, %c0_71] : memref<4x64x64xbf16, #tpu.memory_space<vmem>>, vector<1x64x64xbf16>
    %135 = vector.shape_cast %134 : vector<1x64x64xbf16> to vector<64x64xbf16>
    %cst_72 = arith.constant dense<0.000000e+00> : vector<8x64xf32>
    %136 = tpu.matmul %133, %135, %cst_72 {dimension_numbers = #tpu.dot_dimension_numbers<[1], [0], [0], [1], [0, 0, 1, 1], [], []>} : vector<8x64xbf16>, vector<64x64xbf16>, vector<8x64xf32> -> vector<8x64xf32>
    %c2_73 = arith.constant 2 : index
    %c0_74 = arith.constant 0 : index
    %c0_75 = arith.constant 0 : index
    %137 = vector.load %arg7[%c2_73, %c0_74, %c0_75] : memref<4x1x64xf32, #tpu.memory_space<vmem>>, vector<1x1x64xf32>
    %138 = vector.shape_cast %137 : vector<1x1x64xf32> to vector<1x64xf32>
    %139 = vector.broadcast %138 : vector<1x64xf32> to vector<8x64xf32>
    %140 = arith.addf %136, %139 : vector<8x64xf32>
    %cst_76 = arith.constant 0.000000e+00 : f32
    %141 = vector.broadcast %cst_76 : f32 to vector<8x64xf32>
    %142 = arith.maximumf %140, %141 : vector<8x64xf32>
    %143 = arith.truncf %142 : vector<8x64xf32> to vector<8x64xbf16>
    %c2_77 = arith.constant 2 : index
    %c0_78 = arith.constant 0 : index
    %c0_79 = arith.constant 0 : index
    %144 = vector.load %arg8[%c2_77, %c0_78, %c0_79] : memref<4x64x16xbf16, #tpu.memory_space<vmem>>, vector<1x64x16xbf16>
    %145 = vector.shape_cast %144 : vector<1x64x16xbf16> to vector<64x16xbf16>
    %cst_80 = arith.constant dense<0.000000e+00> : vector<8x16xf32>
    %146 = tpu.matmul %143, %145, %cst_80 {dimension_numbers = #tpu.dot_dimension_numbers<[1], [0], [0], [1], [0, 0, 1, 1], [], []>} : vector<8x64xbf16>, vector<64x16xbf16>, vector<8x16xf32> -> vector<8x16xf32>
    %c2_81 = arith.constant 2 : index
    %c0_82 = arith.constant 0 : index
    %c0_83 = arith.constant 0 : index
    %147 = vector.load %arg9[%c2_81, %c0_82, %c0_83] : memref<4x1x16xf32, #tpu.memory_space<vmem>>, vector<1x1x16xf32>
    %148 = vector.shape_cast %147 : vector<1x1x16xf32> to vector<1x16xf32>
    %149 = vector.broadcast %148 : vector<1x16xf32> to vector<8x16xf32>
    %150 = arith.addf %146, %149 : vector<8x16xf32>
    %151 = vector.extract_strided_slice %150 {offsets = [0, 0], sizes = [8, 8], strides = [1, 1]} : vector<8x16xf32> to vector<8x8xf32>
    %152 = vector.extract_strided_slice %150 {offsets = [0, 8], sizes = [8, 8], strides = [1, 1]} : vector<8x16xf32> to vector<8x8xf32>
    %153 = math.exp %152 : vector<8x8xf32>
    %154 = arith.mulf %89, %153 : vector<8x8xf32>
    %155 = arith.addf %154, %151 : vector<8x8xf32>
    %156 = arith.truncf %155 : vector<8x8xf32> to vector<8x8xbf16>
    %c3_84 = arith.constant 3 : index
    %c0_85 = arith.constant 0 : index
    %c0_86 = arith.constant 0 : index
    %157 = vector.load %arg4[%c3_84, %c0_85, %c0_86] : memref<4x8x64xbf16, #tpu.memory_space<vmem>>, vector<1x8x64xbf16>
    %158 = vector.shape_cast %157 : vector<1x8x64xbf16> to vector<8x64xbf16>
    %cst_87 = arith.constant dense<0.000000e+00> : vector<8x64xf32>
    %159 = tpu.matmul %156, %158, %cst_87 {dimension_numbers = #tpu.dot_dimension_numbers<[1], [0], [0], [1], [0, 0, 1, 1], [], []>} : vector<8x8xbf16>, vector<8x64xbf16>, vector<8x64xf32> -> vector<8x64xf32>
    %c3_88 = arith.constant 3 : index
    %c0_89 = arith.constant 0 : index
    %c0_90 = arith.constant 0 : index
    %160 = vector.load %arg5[%c3_88, %c0_89, %c0_90] : memref<4x1x64xf32, #tpu.memory_space<vmem>>, vector<1x1x64xf32>
    %161 = vector.shape_cast %160 : vector<1x1x64xf32> to vector<1x64xf32>
    %162 = vector.broadcast %161 : vector<1x64xf32> to vector<8x64xf32>
    %163 = arith.addf %159, %162 : vector<8x64xf32>
    %cst_91 = arith.constant 0.000000e+00 : f32
    %164 = vector.broadcast %cst_91 : f32 to vector<8x64xf32>
    %165 = arith.maximumf %163, %164 : vector<8x64xf32>
    %166 = arith.truncf %165 : vector<8x64xf32> to vector<8x64xbf16>
    %c3_92 = arith.constant 3 : index
    %c0_93 = arith.constant 0 : index
    %c0_94 = arith.constant 0 : index
    %167 = vector.load %arg6[%c3_92, %c0_93, %c0_94] : memref<4x64x64xbf16, #tpu.memory_space<vmem>>, vector<1x64x64xbf16>
    %168 = vector.shape_cast %167 : vector<1x64x64xbf16> to vector<64x64xbf16>
    %cst_95 = arith.constant dense<0.000000e+00> : vector<8x64xf32>
    %169 = tpu.matmul %166, %168, %cst_95 {dimension_numbers = #tpu.dot_dimension_numbers<[1], [0], [0], [1], [0, 0, 1, 1], [], []>} : vector<8x64xbf16>, vector<64x64xbf16>, vector<8x64xf32> -> vector<8x64xf32>
    %c3_96 = arith.constant 3 : index
    %c0_97 = arith.constant 0 : index
    %c0_98 = arith.constant 0 : index
    %170 = vector.load %arg7[%c3_96, %c0_97, %c0_98] : memref<4x1x64xf32, #tpu.memory_space<vmem>>, vector<1x1x64xf32>
    %171 = vector.shape_cast %170 : vector<1x1x64xf32> to vector<1x64xf32>
    %172 = vector.broadcast %171 : vector<1x64xf32> to vector<8x64xf32>
    %173 = arith.addf %169, %172 : vector<8x64xf32>
    %cst_99 = arith.constant 0.000000e+00 : f32
    %174 = vector.broadcast %cst_99 : f32 to vector<8x64xf32>
    %175 = arith.maximumf %173, %174 : vector<8x64xf32>
    %176 = arith.truncf %175 : vector<8x64xf32> to vector<8x64xbf16>
    %c3_100 = arith.constant 3 : index
    %c0_101 = arith.constant 0 : index
    %c0_102 = arith.constant 0 : index
    %177 = vector.load %arg8[%c3_100, %c0_101, %c0_102] : memref<4x64x16xbf16, #tpu.memory_space<vmem>>, vector<1x64x16xbf16>
    %178 = vector.shape_cast %177 : vector<1x64x16xbf16> to vector<64x16xbf16>
    %cst_103 = arith.constant dense<0.000000e+00> : vector<8x16xf32>
    %179 = tpu.matmul %176, %178, %cst_103 {dimension_numbers = #tpu.dot_dimension_numbers<[1], [0], [0], [1], [0, 0, 1, 1], [], []>} : vector<8x64xbf16>, vector<64x16xbf16>, vector<8x16xf32> -> vector<8x16xf32>
    %c3_104 = arith.constant 3 : index
    %c0_105 = arith.constant 0 : index
    %c0_106 = arith.constant 0 : index
    %180 = vector.load %arg9[%c3_104, %c0_105, %c0_106] : memref<4x1x16xf32, #tpu.memory_space<vmem>>, vector<1x1x16xf32>
    %181 = vector.shape_cast %180 : vector<1x1x16xf32> to vector<1x16xf32>
    %182 = vector.broadcast %181 : vector<1x16xf32> to vector<8x16xf32>
    %183 = arith.addf %179, %182 : vector<8x16xf32>
    %184 = vector.extract_strided_slice %183 {offsets = [0, 0], sizes = [8, 8], strides = [1, 1]} : vector<8x16xf32> to vector<8x8xf32>
    %185 = vector.extract_strided_slice %183 {offsets = [0, 8], sizes = [8, 8], strides = [1, 1]} : vector<8x16xf32> to vector<8x8xf32>
    %186 = math.exp %185 : vector<8x8xf32>
    %187 = arith.mulf %122, %186 : vector<8x8xf32>
    %188 = arith.addf %187, %184 : vector<8x8xf32>
    %189 = tpu.concatenate %188, %155 in 1 : vector<8x8xf32>, vector<8x8xf32> -> vector<8x16xf32>
    %c0_107 = arith.constant 0 : index
    %c0_108 = arith.constant 0 : index
    %190 = vector.load %arg10[%c0_107, %c0_108] : memref<8x16xf32, #tpu.memory_space<vmem>>, vector<8x16xf32>
    tpu.vector_store %arg10[%c0_107, %c0_108], %189 {strides = array<i32>} : memref<8x16xf32, #tpu.memory_space<vmem>>, vector<8x16xf32>,
    return
  }
  func.func @transform_0(%arg0: i32) -> (i32, i32, i32) {
    %c0_i32 = arith.constant 0 : i32
    %c0_i32_0 = arith.constant 0 : i32
    %c0_i32_1 = arith.constant 0 : i32
    return %c0_i32, %arg0, %c0_i32_0 : i32, i32, i32
  }
  func.func @transform_1(%arg0: i32) -> (i32, i32) {
    %c0_i32 = arith.constant 0 : i32
    %c0_i32_0 = arith.constant 0 : i32
    return %arg0, %c0_i32 : i32, i32
  }
  func.func @transform_2(%arg0: i32) -> (i32, i32) {
    %c0_i32 = arith.constant 0 : i32
    %c0_i32_0 = arith.constant 0 : i32
    return %arg0, %c0_i32 : i32, i32
  }
  func.func @transform_3(%arg0: i32) -> (i32, i32, i32) {
    %c0_i32 = arith.constant 0 : i32
    %c0_i32_0 = arith.constant 0 : i32
    %c0_i32_1 = arith.constant 0 : i32
    %c0_i32_2 = arith.constant 0 : i32
    return %c0_i32, %c0_i32_0, %c0_i32_1 : i32, i32, i32
  }
  func.func @transform_4(%arg0: i32) -> (i32, i32, i32) {
    %c0_i32 = arith.constant 0 : i32
    %c0_i32_0 = arith.constant 0 : i32
    %c0_i32_1 = arith.constant 0 : i32
    %c0_i32_2 = arith.constant 0 : i32
    return %c0_i32, %c0_i32_0, %c0_i32_1 : i32, i32, i32
  }
  func.func @transform_5(%arg0: i32) -> (i32, i32, i32) {
    %c0_i32 = arith.constant 0 : i32
    %c0_i32_0 = arith.constant 0 : i32
    %c0_i32_1 = arith.constant 0 : i32
    %c0_i32_2 = arith.constant 0 : i32
    return %c0_i32, %c0_i32_0, %c0_i32_1 : i32, i32, i32
  }
  func.func @transform_6(%arg0: i32) -> (i32, i32, i32) {
    %c0_i32 = arith.constant 0 : i32
    %c0_i32_0 = arith.constant 0 : i32
    %c0_i32_1 = arith.constant 0 : i32
    %c0_i32_2 = arith.constant 0 : i32
    return %c0_i32, %c0_i32_0, %c0_i32_1 : i32, i32, i32
  }
  func.func @transform_7(%arg0: i32) -> (i32, i32, i32) {
    %c0_i32 = arith.constant 0 : i32
    %c0_i32_0 = arith.constant 0 : i32
    %c0_i32_1 = arith.constant 0 : i32
    %c0_i32_2 = arith.constant 0 : i32
    return %c0_i32, %c0_i32_0, %c0_i32_1 : i32, i32, i32
  }
  func.func @transform_8(%arg0: i32) -> (i32, i32, i32) {
    %c0_i32 = arith.constant 0 : i32
    %c0_i32_0 = arith.constant 0 : i32
    %c0_i32_1 = arith.constant 0 : i32
    %c0_i32_2 = arith.constant 0 : i32
    return %c0_i32, %c0_i32_0, %c0_i32_1 : i32, i32, i32
  }
  func.func @transform_9(%arg0: i32) -> (i32, i32) {
    %c0_i32 = arith.constant 0 : i32
    %c0_i32_0 = arith.constant 0 : i32
    return %arg0, %c0_i32 : i32, i32
  }
}

</mosaic_0001>

<bundles_post_ra>
// kernel: flow_auto_forward.1
= control target key start
LH: loop header
LB: loop body
LE: loop exit
PB: predicated region body
PF: predicated region fallthrough
CT: control target
= control target key end

     0   :  { %vm98_vm0 = vcmask 1043456   ;;  %vm94_vm1 = vcmask 64512   ;;  %s1240_s0 = inlined_call_operand.vmem [shape: f32[4,8,16], index: 0, kind: input, shape index: {}]   ;;  %s1241_s1 = inlined_call_operand.vmem [shape: f32[8,16], index: 1, kind: input, shape index: {}]   ;;  %s1242_s2 = inlined_call_operand.vmem [shape: f32[8,16], index: 2, kind: input, shape index: {}]   ;;  %s1243_s3 = inlined_call_operand.vmem [shape: bf16[4,8,64], index: 3, kind: input, shape index: {}]   ;;  %s1244_s4 = inlined_call_operand.vmem [shape: f32[4,1,64], index: 4, kind: input, shape index: {}]   ;;  %s1245_s5 = inlined_call_operand.vmem [shape: bf16[4,64,64], index: 5, kind: input, shape index: {}]   ;;  %s1246_s6 = inlined_call_operand.vmem [shape: f32[4,1,64], index: 6, kind: input, shape index: {}]   ;;  %s1247_s7 = inlined_call_operand.vmem [shape: bf16[4,64,16], index: 7, kind: input, shape index: {}]   ;;  %s1248_s8 = inlined_call_operand.vmem [shape: f32[4,1,16], index: 8, kind: input, shape index: {}]   ;;  %s1249_s9 = inlined_call_operand.hbm [shape: f32[8,16], index: 9, kind: output, shape index: {}]  }
   0x1   :  { %v89_v0 = vld [vmem:[%s1243_s3] sm:$0xf]  ;;  %v901_v5 = vld [vmem:[%s1245_s5 + $0x18] sm:$0xff]  ;;  %v900_v6 = vld [vmem:[%s1245_s5 + $0x10] sm:$0xff] }
   0x2   :  { %v34_v1 = vld [vmem:[%s1241_s1] sm:$0xff]  ;;  %v100_v3 = vsel %vm98_vm0, %v89_v0, 0  ;;  %161 = vmatpush.bf16.msra.mxu1 %v901_v5 }
   0x3   :  { %v35_v2 = vld [vmem:[%s1242_s2] sm:$0xff]  ;;  %109 = vmatpush.bf16.msra.mxu0 %v100_v3 }
   0x4   :  { %v1042_v4 = vadd.f32 %v35_v2, %v34_v1 }
   0x6   :  { %v88_v7 = vpack.c.bf16 %v1042_v4, %v1042_v4 }
   0x8   :  { %698 = vmatmul.msk.bf16.vlgmr.msra.gmra.mxu0 %vm94_vm1, %v88_v7 }
   0x9   :  { %14 = vsyncpa [#allocation3], 0  ;;  %162 = vmatpush.bf16.msra.mxu1 %v900_v6  ;;  %v899_v8 = vld [vmem:[%s1245_s5 + $0x8] sm:$0xff]  ;;  %v898_v9 = vld [vmem:[%s1245_s5] sm:$0xff]  ;;  %vm153_vm2 = vcmask 523264   ;;  %vm41_vm3 = vcmask 130048   ;;  %v37_v48 = vlaneseq }
   0xa   :  { %v905_v10 = vld [vmem:[%s1247_s7 + $0x18] sm:$0xff]  ;;  %v904_v11 = vld [vmem:[%s1247_s7 + $0x10] sm:$0xff]  ;;  %v933_v12 = vld [vmem:[%s1244_s4] ss:$0 sm:$0xff]  ;;  %s979_s2 = smov 120   ;;  %s686_s23 = sshll.u32 %s1249_s9, 4  ;;  %s687_s23 = int_to_ptr.hbm [resolvable:$true] %s686_s23 }
   0xb   :  { %215 = vmatpush.bf16.msra.mxu2 %v905_v10  ;;  %v903_v18 = vld [vmem:[%s1247_s7 + $0x8] sm:$0xff]  ;;  %v902_v19 = vld [vmem:[%s1247_s7] sm:$0xff]  ;;  %v697_v22 = vld [vmem:[%s1240_s0 + $0x18] sm:$0xff]  ;;  %v38_v51 = vand.u32 127, %v37_v48 }
   0xc   :  { %v39_v20 = vld [vmem:[%s1240_s0] sm:$0xff]  ;;  %v695_v21 = vld [vmem:[%s1240_s0 + $0x8] sm:$0xff]  ;;  %v75_v25 = vmul.f32 %v697_v22, %v34_v1  ;;  %v696_v26 = vld [vmem:[%s1240_s0 + $0x10] sm:$0xff] }
   0xd   :  { %163 = vmatpush.bf16.msra.mxu1 %v899_v8  ;;  %v40_v23 = vmul.f32 %v39_v20, %v34_v1  ;;  %v55_v24 = vmul.f32 %v695_v21, %v34_v1  ;;  %v65_v30 = vmul.f32 %v696_v26, %v34_v1  ;;  %v934_v32 = vld [vmem:[%s1246_s6] ss:$0 sm:$0xff]  ;;  %v733_v44 = vld [vmem:[%s1243_s3 + $0x4] sm:$0xf]  ;;  %v909_v47 = vld [vmem:[%s1245_s5 + $0x38] sm:$0xff]  ;;  %vm45_vm4 = vcmp.eq.s32.totalorder %v38_v51, 4 }
   0xe   :  { %v76_v29 = vsel %vm41_vm3, %v75_v25, 0.0  ;;  %v935_v38 = vld [vmem:[%s1248_s8] ss:$0 sm:$0xff]  ;;  %v244_v45 = vsel %vm98_vm0, %v733_v44, 0  ;;  %306 = vmatpush.bf16.msrb.mxu0 %v909_v47  ;;  %v908_v49 = vld [vmem:[%s1245_s5 + $0x30] sm:$0xff]  ;;  %v907_v52 = vld [vmem:[%s1245_s5 + $0x28] sm:$0xff] }
   0xf   :  { %216 = vmatpush.bf16.msra.mxu2 %v904_v11  ;;  %v42_v27 = vsel %vm41_vm3, %v40_v23, 0.0  ;;  %v56_v28 = vsel %vm41_vm3, %v55_v24, 0.0  ;;  %77 = vadd.xlane.f32.xlu2 %v76_v29  ;;  %v66_v31 = vsel %vm41_vm3, %v65_v30, 0.0  ;;  %vm59_vm5 = vcmp.eq.s32.totalorder %v38_v51, 5  ;;  %v913_v3 = vld [vmem:[%s1247_s7 + $0x38] sm:$0xff]  ;;  %v912_v5 = vld [vmem:[%s1247_s7 + $0x30] sm:$0xff] }
  0x10   :  { %43 = vadd.xlane.f32.xlu0 %v42_v27  ;;  %57 = vadd.xlane.f32.xlu1 %v56_v28  ;;  %vm69_vm6 = vcmp.eq.s32.totalorder %v38_v51, 6  ;;  %vm79_vm7 = vcmp.eq.s32.totalorder %v38_v51, 7  ;;  %v911_v6 = vld [vmem:[%s1247_s7 + $0x28] sm:$0xff]  ;;  %v936_v7 = vld [vmem:[%s1244_s4 + $0x1] ss:$0 sm:$0xff]  ;;  %v917_v28 = vld [vmem:[%s1245_s5 + $0x58] sm:$0xff] }
  0x11   :  { %164 = vmatpush.bf16.msra.mxu1 %v898_v9  ;;  %253 = vmatpush.bf16.msra.mxu3 %v244_v45  ;;  %v788_v20 = vld [vmem:[%s1243_s3 + $0x8] sm:$0xf]  ;;  %v938_v22 = vld [vmem:[%s1248_s8 + $0x1] ss:$0 sm:$0xff]  ;;  %v916_v29 = vld [vmem:[%s1245_s5 + $0x50] sm:$0xff] }
  0x12   :  { %307 = vmatpush.bf16.msrb.mxu0 %v908_v49  ;;  %v391_v21 = vsel %vm98_vm0, %v788_v20, 0  ;;  %v915_v30 = vld [vmem:[%s1245_s5 + $0x48] sm:$0xff]  ;;  %v918_v44 = vld [vmem:[%s1247_s7 + $0x40] sm:$0xff] }
  0x13   :  { %217 = vmatpush.bf16.msra.mxu2 %v903_v18  ;;  %v940_v45 = vld [vmem:[%s1246_s6 + $0x2] ss:$0 sm:$0xff]  ;;  %v843_v51 = vld [vmem:[%s1243_s3 + $0xc] sm:$0xf]  ;;  %s980_s3 = smov 8  }
  0x14   :  { %v944_v20 = vld [vmem:[%s1248_s8 + $0x3] ss:$0 sm:$0xff] }
  0x15   :  { %362 = vmatpush.bf16.msrb.mxu3 %v913_v3  ;;  %400 = vmatpush.bf16.msrb.mxu1 %v391_v21  ;;  %v929_v3 = vld [vmem:[%s1247_s7 + $0x78] sm:$0xff] }
  0x16   :  { %308 = vmatpush.bf16.msrb.mxu0 %v907_v52  ;;  %v538_v52 = vsel %vm98_vm0, %v843_v51, 0 }
  0x17   :  { %218 = vmatpush.bf16.msra.mxu2 %v902_v19 }
  0x18   :  { %67 = vadd.xlane.f32.xlu1 %v66_v31 }
  0x19   :  { %363 = vmatpush.bf16.msrb.mxu3 %v912_v5  ;;  %v928_v5 = vld [vmem:[%s1247_s7 + $0x70] sm:$0xff] }
  0x1b   :  { %453 = vmatpush.bf16.msrb.mxu2 %v917_v28 }
  0x1d   :  { %364 = vmatpush.bf16.msrb.mxu3 %v911_v6  ;;  %v927_v6 = vld [vmem:[%s1247_s7 + $0x68] sm:$0xff] }
  0x1f   :  { %454 = vmatpush.bf16.msrb.mxu2 %v916_v29 }
  0x23   :  { %455 = vmatpush.bf16.msrb.mxu2 %v915_v30 }
  0x24   :  { %49 = vrot.lane.b32.xlu0 %v34_v1, %s979_s2 }
  0x27   :  { %84 = vrot.lane.b32.xlu2 %v35_v2, %s979_s2  ;;  %v906_v2 = vld [vmem:[%s1245_s5 + $0x20] sm:$0xff] }
  0x28   :  { %309 = vmatpush.bf16.msrb.mxu0 %v906_v2  ;;  %v922_v2 = vld [vmem:[%s1245_s5 + $0x60] sm:$0xff] }
  0x82   :  { %v78_v54 = vpop.xlane.xlu2 %77 }
  0x83   :  { %v44_v46 = vpop.xlane.xlu0 %43  ;;  %v58_v50 = vpop.xlane.xlu1 %57 }
  0x85   :  { %v111_v13 = vpop.f32.mrf.mxu0 }
  0x86   :  { %v112_v14 = vadd.f32 %v933_v12, %v111_v13  ;;  %v910_v13 = vld [vmem:[%s1247_s7 + $0x20] sm:$0xff] }
  0x87   :  { %365 = vmatpush.bf16.msrb.mxu3 %v910_v13  ;;  %v926_v13 = vld [vmem:[%s1247_s7 + $0x60] sm:$0xff] }
  0x88   :  { %v115_v15 = vmax.f32 %v112_v14, 0.0  ;;  %v937_v14 = vld [vmem:[%s1246_s6 + $0x1] ss:$0 sm:$0xff] }
  0x8a   :  { %v116_v16 = vpack.c.bf16 %v115_v15, %v115_v15  ;;  %v85_v59 = vpop.permute.xlu2 %84 }
  0x8b   :  { %v68_v56 = vpop.xlane.xlu1 %67 }
  0x8c   :  { %715 = vmatmul.msk.bf16.vlgmr.msra.gmra.mxu1 %vm153_vm2, %v116_v16 }
  0x8d   :  { %v113_v17 = vpop.f32.mrf.mxu0 }
  0x96   :  { %v50_v53 = vpop.permute.xlu0 %49 }
  0x97   :  { %v52_v55 = vsel %vm45_vm4, %v44_v46, %v50_v53  ;;  %v941_v53 = vld [vmem:[%s1248_s8 + $0x2] ss:$0 sm:$0xff] }
  0x98   :  { %v62_v57 = vsel %vm59_vm5, %v58_v50, %v52_v55 }
  0x99   :  { %v72_v58 = vsel %vm69_vm6, %v68_v56, %v62_v57 }
  0x9a   :  { %v82_v60 = vsel %vm79_vm7, %v78_v54, %v72_v58 }
  0x9b   :  { %v87_v61 = vadd.f32 %v85_v59, %v82_v60 }
 0x109   :  { %v166_v33 = vpop.f32.mrf.mxu1 }
 0x10a   :  { %v167_v34 = vadd.f32 %v934_v32, %v166_v33 }
 0x10c   :  { %v170_v35 = vmax.f32 %v167_v34, 0.0 }
 0x10e   :  { %v171_v36 = vpack.c.bf16 %v170_v35, %v170_v35  ;;  %v914_v35 = vld [vmem:[%s1245_s5 + $0x40] sm:$0xff] }
 0x10f   :  { %456 = vmatpush.bf16.msrb.mxu2 %v914_v35 }
 0x110   :  { %732 = vmatmul.msk.bf16.vlgmr.msra.gmra.mxu2 %vm153_vm2, %v171_v36  ;;  %v921_v36 = vld [vmem:[%s1247_s7 + $0x58] sm:$0xff] }
 0x111   :  { %v168_v37 = vpop.f32.mrf.mxu1  ;;  %509 = vmatpush.bf16.msra.mxu0 %v921_v36 }
 0x112   :  { %v919_v37 = vld [vmem:[%s1247_s7 + $0x48] sm:$0xff] }
 0x113   :  { %656 = vmatpush.bf16.msra.mxu2 %v929_v3 }
 0x117   :  { %657 = vmatpush.bf16.msra.mxu2 %v928_v5 }
 0x11b   :  { %658 = vmatpush.bf16.msra.mxu2 %v927_v6 }
 0x11f   :  { %659 = vmatpush.bf16.msra.mxu2 %v926_v13 }
 0x193   :  { %v220_v39 = vpop.f32.mrf.mxu2 }
 0x194   :  { %v221_v40 = vadd.f32 %v935_v38, %v220_v39  ;;  %v939_v38 = vld [vmem:[%s1244_s4 + $0x2] ss:$0 sm:$0xff] }
 0x196   :  { %v224_v41 = vmul.f32 1.442695, %v221_v40 }
 0x198   :  { %945 = vpow2.f32 %v224_v41 }
 0x19b   :  { %v222_v42 = vpop.f32.mrf.mxu2 }
 0x19e   :  { %v946_v43 = vpop.eup %945 }
 0x19f   :  { %227 = vrot.lane.b32.xlu1 %v946_v43, %s979_s2 }
 0x211   :  { %v228_v62 = vpop.permute.xlu1 %227 }
 0x212   :  { %v230_v63 = vmul.f32 %v228_v62, %v87_v61 }
 0x214   :  { %v1114_v0 = vadd.f32 %v230_v63, %v221_v40  ;;  %v925_v63 = vld [vmem:[%s1245_s5 + $0x78] sm:$0xff] }
 0x215   :  { %600 = vmatpush.bf16.msra.mxu1 %v925_v63 }
 0x216   :  { %v232_v1 = vpack.c.bf16 %v1114_v0, %v1114_v0 }
 0x218   :  { %735 = vmatmul.msk.bf16.vlgmr.msra.gmra.mxu3 %vm94_vm1, %v232_v1  ;;  %v924_v1 = vld [vmem:[%s1245_s5 + $0x70] sm:$0xff] }
 0x219   :  { %547 = vmatpush.bf16.msra.mxu3 %v538_v52  ;;  %601 = vmatpush.bf16.msra.mxu1 %v924_v1 }
 0x29b   :  { %v255_v8 = vpop.f32.mrf.mxu3 }
 0x29c   :  { %v256_v9 = vadd.f32 %v936_v7, %v255_v8  ;;  %v942_v7 = vld [vmem:[%s1244_s4 + $0x3] ss:$0 sm:$0xff] }
 0x29e   :  { %v259_v10 = vmax.f32 %v256_v9, 0.0 }
 0x2a0   :  { %v260_v11 = vpack.c.bf16 %v259_v10, %v259_v10 }
 0x2a2   :  { %761 = vmatmul.msk.bf16.vlgmr.msrb.gmra.mxu0 %vm153_vm2, %v260_v11 }
 0x2a3   :  { %v257_v12 = vpop.f32.mrf.mxu3 }
 0x31f   :  { %v311_v15 = vpop.f32.mrf.mxu0 }
 0x320   :  { %v312_v16 = vadd.f32 %v937_v14, %v311_v15  ;;  %v943_v14 = vld [vmem:[%s1246_s6 + $0x3] ss:$0 sm:$0xff]  ;;  %s981_s6 = smov [#allocation2]  }
 0x322   :  { %v315_v17 = vmax.f32 %v312_v16, 0.0 }
 0x324   :  { %v316_v18 = vpack.c.bf16 %v315_v17, %v315_v17 }
 0x326   :  { %787 = vmatmul.msk.bf16.vlgmr.msrb.gmra.mxu3 %vm153_vm2, %v316_v18 }
 0x327   :  { %v313_v19 = vpop.f32.mrf.mxu0 }
 0x3a9   :  { %v367_v23 = vpop.f32.mrf.mxu3 }
 0x3aa   :  { %v368_v24 = vadd.f32 %v938_v22, %v367_v23 }
 0x3ac   :  { %v371_v25 = vmul.f32 1.442695, %v368_v24 }
 0x3ae   :  { %947 = vpow2.f32 %v371_v25 }
 0x3b1   :  { %v369_v26 = vpop.f32.mrf.mxu3 }
 0x3b4   :  { %v948_v27 = vpop.eup %947 }
 0x3b5   :  { %374 = vrot.lane.b32.xlu0 %v948_v27, %s979_s2 }
 0x427   :  { %v375_v31 = vpop.permute.xlu0 %374 }
 0x428   :  { %v377_v32 = vmul.f32 %v375_v31, %v1042_v4  ;;  %v920_v4 = vld [vmem:[%s1247_s7 + $0x50] sm:$0xff]  ;;  %s684_s7 = sshll.u32 %s981_s6, 4  ;;  %s685_s7 = int_to_ptr.vmem [resolvable:$true] %s684_s7 }
 0x429   :  { %510 = vmatpush.bf16.msra.mxu0 %v920_v4 }
 0x42a   :  { %v1160_v33 = vadd.f32 %v377_v32, %v368_v24 }
 0x42c   :  { %v379_v34 = vpack.c.bf16 %v1160_v33, %v1160_v33 }
 0x42d   :  { %511 = vmatpush.bf16.msra.mxu0 %v919_v37 }
 0x42e   :  { %790 = vmatmul.msk.bf16.vlgmr.msrb.gmra.mxu1 %vm94_vm1, %v379_v34 }
 0x431   :  { %512 = vmatpush.bf16.msra.mxu0 %v918_v44 }
 0x4ab   :  { %v402_v39 = vpop.f32.mrf.mxu1 }
 0x4ac   :  { %v403_v40 = vadd.f32 %v939_v38, %v402_v39 }
 0x4ae   :  { %v406_v41 = vmax.f32 %v403_v40, 0.0 }
 0x4b0   :  { %v407_v42 = vpack.c.bf16 %v406_v41, %v406_v41 }
 0x4b2   :  { %816 = vmatmul.msk.bf16.vlgmr.msrb.gmra.mxu2 %vm153_vm2, %v407_v42 }
 0x4b3   :  { %v404_v43 = vpop.f32.mrf.mxu1 }
 0x535   :  { %v458_v46 = vpop.f32.mrf.mxu2 }
 0x536   :  { %v459_v47 = vadd.f32 %v940_v45, %v458_v46 }
 0x538   :  { %v462_v48 = vmax.f32 %v459_v47, 0.0 }
 0x53a   :  { %v463_v49 = vpack.c.bf16 %v462_v48, %v462_v48 }
 0x53c   :  { %842 = vmatmul.msk.bf16.vlgmr.msra.gmra.mxu0 %vm153_vm2, %v463_v49 }
 0x53d   :  { %v460_v50 = vpop.f32.mrf.mxu2 }
 0x5b9   :  { %v514_v54 = vpop.f32.mrf.mxu0 }
 0x5ba   :  { %v515_v55 = vadd.f32 %v941_v53, %v514_v54 }
 0x5bc   :  { %v518_v56 = vmul.f32 1.442695, %v515_v55 }
 0x5be   :  { %949 = vpow2.f32 %v518_v56 }
 0x5c1   :  { %v516_v57 = vpop.f32.mrf.mxu0 }
 0x5c4   :  { %v950_v58 = vpop.eup %949 }
 0x5c5   :  { %521 = vrot.lane.b32.xlu2 %v950_v58, %s979_s2 }
 0x61f   :  { %v522_v59 = vpop.permute.xlu2 %521 }
 0x620   :  { %v524_v60 = vmul.f32 %v522_v59, %v1114_v0  ;;  %v923_v0 = vld [vmem:[%s1245_s5 + $0x68] sm:$0xff] }
 0x621   :  { %602 = vmatpush.bf16.msra.mxu1 %v923_v0 }
 0x622   :  { %v525_v61 = vadd.f32 %v524_v60, %v515_v55 }
 0x624   :  { %v526_v62 = vpack.c.bf16 %v525_v61, %v525_v61  ;;  %674 = vrot.lane.b32.xlu2 %v525_v61, %s980_s3 }
 0x625   :  { %603 = vmatpush.bf16.msra.mxu1 %v922_v2 }
 0x626   :  { %845 = vmatmul.msk.bf16.vlgmr.msra.gmra.mxu3 %vm94_vm1, %v526_v62 }
 0x67e   :  { %v675_v29 = vpop.permute.xlu2 %674 }
 0x6a9   :  { %v549_v8 = vpop.f32.mrf.mxu3 }
 0x6aa   :  { %v550_v9 = vadd.f32 %v942_v7, %v549_v8 }
 0x6ac   :  { %v553_v10 = vmax.f32 %v550_v9, 0.0 }
 0x6ae   :  { %v554_v11 = vpack.c.bf16 %v553_v10, %v553_v10 }
 0x6b0   :  { %871 = vmatmul.msk.bf16.vlgmr.msra.gmra.mxu1 %vm153_vm2, %v554_v11 }
 0x6b1   :  { %v551_v12 = vpop.f32.mrf.mxu3 }
 0x72d   :  { %v605_v15 = vpop.f32.mrf.mxu1 }
 0x72e   :  { %v606_v16 = vadd.f32 %v943_v14, %v605_v15 }
 0x730   :  { %v609_v17 = vmax.f32 %v606_v16, 0.0 }
 0x732   :  { %v610_v18 = vpack.c.bf16 %v609_v17, %v609_v17 }
 0x734   :  { %897 = vmatmul.msk.bf16.vlgmr.msra.gmra.mxu2 %vm153_vm2, %v610_v18 }
 0x735   :  { %v607_v19 = vpop.f32.mrf.mxu1 }
 0x7b7   :  { %v661_v21 = vpop.f32.mrf.mxu2 }
 0x7b8   :  { %v662_v22 = vadd.f32 %v944_v20, %v661_v21 }
 0x7ba   :  { %v665_v23 = vmul.f32 1.442695, %v662_v22 }
 0x7bc   :  { %951 = vpow2.f32 %v665_v23 }
 0x7bf   :  { %v663_v24 = vpop.f32.mrf.mxu2 }
 0x7c2   :  { %v952_v25 = vpop.eup %951 }
 0x7c3   :  { %668 = vrot.lane.b32.xlu0 %v952_v25, %s979_s2 }
 0x835   :  { %v669_v26 = vpop.permute.xlu0 %668 }
 0x836   :  { %v671_v27 = vmul.f32 %v669_v26, %v1160_v33 }
 0x838   :  { %v672_v28 = vadd.f32 %v671_v27, %v662_v22 }
 0x83a   :  { %v677_v30 = vsel %vm94_vm1, %v672_v28, %v675_v29 }
 0x83b   :  { %678 = vst.msk [vmem:[#allocation2] sm:$0xff] %vm41_vm3, %v677_v30 }
 0x83c   :  { %689 = dma.vmem_to_hbm [thread:$0]  %s685_s7, 128, %s687_s23, [#allocation3]  }
 0x83d   :  { %977 = dma.done.wait [#allocation3], 128  }
 0x83e   :  { %978 = vsyncadd [#allocation3], 4294967168 }
 0x83f   :  { %694 = vsyncpa [#allocation3], 1 }

</bundles_post_ra>
